<compile_context>
chip_gen: v5e
topology: v5e:2x2
jax: 0.10.0
libtpu: 0.0.40
codegen_flags: <defaults>
</compile_context>

<pallas_src>
import functools

import jax
import jax.numpy as jnp
from jax.experimental import pallas as pl
from jax.experimental.pallas import tpu as pltpu

EPS = 1e-5   # nn.LayerNorm default
LANE = 128   # TPU lane width


def _round_up(x, m):
    return ((x + m - 1) // m) * m


def _vmem_limit_bytes():
    """Generation-aware VMEM budget (leave headroom for compiler scratch)."""
    try:
        cap = int(pltpu.get_tpu_info().vmem_capacity_bytes)
    except Exception:
        return 48 * 1024 * 1024            # safe on every generation
    return int(min(max(cap - 16 * 1024 * 1024, 32 * 1024 * 1024),
                   100 * 1024 * 1024))


def _prenorm_linear_kernel(x_ref, gamma_ref, beta_ref, w_ref, lb_ref, o_ref,
                           *scratch, d, inv_d, tn, nj, masked, matmul_dtype):
    """One (tm, tn) output tile of  Linear(LayerNorm(x)) + x.

    x_ref     : (tm, P)  token tile, full padded feature width (resident over j)
    gamma_ref : (1, P)   f32 LayerNorm weight (zero on padded lanes)
    beta_ref  : (1, P)   f32 LayerNorm bias   (zero on padded lanes)
    w_ref     : (P, tn)  matmul_dtype weight column tile (zero padded rows/cols)
    lb_ref    : (1, tn)  f32 Linear bias tile
    o_ref     : (tm, tn) output tile
    scratch   : () when nj == 1, else (y_ref (tm,P) bf16, xres_ref (nj,tm,tn))
    """

    def layernorm(xf):
        mean = jnp.sum(xf, axis=-1, keepdims=True) * inv_d
        if masked:  # trace-time: only when P != D (padded lanes of xf are 0)
            lane = jax.lax.broadcasted_iota(jnp.int32, (1, xf.shape[-1]), 1)
            centered = jnp.where(lane < d, xf - mean, 0.0)
        else:
            centered = xf - mean
        var = jnp.sum(centered * centered, axis=-1, keepdims=True) * inv_d
        xhat = centered * jax.lax.rsqrt(var + EPS)
        return xhat * gamma_ref[...] + beta_ref[...]

    if nj == 1:
        # Single column tile: LN inline, no scratch, residual = full x block.
        x = x_ref[...]
        xf = x.astype(jnp.float32)
        y = layernorm(xf).astype(matmul_dtype)
        acc = jnp.dot(y, w_ref[...], preferred_element_type=jnp.float32)
        o_ref[...] = (acc + lb_ref[...] + xf).astype(o_ref.dtype)
    else:
        y_ref, xres_ref = scratch
        j = pl.program_id(1)

        # LN (f32 math, bf16 cast) only once per token tile; also stash the
        # residual column slices so the inner j loop never re-reads x from HBM.
        @pl.when(j == 0)
        def _():
            x = x_ref[...]
            xf = x.astype(jnp.float32)
            y_ref[...] = layernorm(xf).astype(y_ref.dtype)
            for jj in range(nj):                       # static lane slices
                xres_ref[jj] = x[:, jj * tn:(jj + 1) * tn]

        acc = jnp.dot(y_ref[...], w_ref[...], preferred_element_type=jnp.float32)
        xres = xres_ref[j].astype(jnp.float32)
        o_ref[...] = (acc + lb_ref[...] + xres).astype(o_ref.dtype)


def prepare_params(gamma, beta, w, b, *, matmul_dtype=jnp.bfloat16):
    """One-time parameter prep (pad to lane width, cast W). Call at setup, not
    per forward call."""
    D = w.shape[0]
    P = _round_up(D, LANE)
    gamma32 = gamma.astype(jnp.float32)
    beta32 = beta.astype(jnp.float32)
    b32 = b.astype(jnp.float32)
    w_c = w.astype(matmul_dtype)
    if P == D:
        gamma_p = gamma32.reshape(1, D)
        beta_p = beta32.reshape(1, D)
        lb_p = b32.reshape(1, D)
        w_p = w_c
    else:
        gamma_p = jnp.zeros((1, P), jnp.float32).at[0, :D].set(gamma32)
        beta_p = jnp.zeros((1, P), jnp.float32).at[0, :D].set(beta32)
        lb_p = jnp.zeros((1, P), jnp.float32).at[0, :D].set(b32)
        w_p = jnp.zeros((P, P), matmul_dtype).at[:D, :D].set(w_c)
    return {"gamma": gamma_p, "beta": beta_p, "bias": lb_p, "w": w_p, "d": D}


def prenorm_residual(x, params, *, tm=512, tn_max=2048):
    """out = Linear(LayerNorm(x)) + x.   x: (B, S, D), params: prepare_params()."""
    B, S, D = x.shape
    assert params["d"] == D
    M = B * S
    P = params["w"].shape[0]                 # round_up(D, 128)

    # Column tile tn: single resident (P, P) weight tile when it fits, else the
    # largest multiple-of-128 divisor of P that is <= tn_max.
    if P <= tn_max:
        tn = P
    else:
        q = P // LANE
        tn = LANE
        for dc in range(tn_max // LANE, 0, -1):
            if q % dc == 0:
                tn = dc * LANE
                break
    nj = P // tn

    # Token tiling: big tiles for large M; small inputs collapse to one tile.
    tm_eff = tm if M >= tm else _round_up(M, 8)
    M_pad = _round_up(M, tm_eff)

    xf = x.reshape(M, D)
    if M_pad == M and P == D:
        x_p = xf                              # common case: no padding copy
    else:
        x_p = jnp.zeros((M_pad, P), x.dtype).at[:M, :D].set(xf)

    grid = (M_pad // tm_eff, nj)
    matmul_dtype = params["w"].dtype
    kernel = functools.partial(_prenorm_linear_kernel, d=D, inv_d=1.0 / D,
                               tn=tn, nj=nj, masked=(P != D),
                               matmul_dtype=matmul_dtype)

    scratch_shapes = []
    if nj > 1:
        scratch_shapes = [
            pltpu.VMEM((tm_eff, P), matmul_dtype),    # cached LayerNorm output
            pltpu.VMEM((nj, tm_eff, tn), x.dtype),    # residual column slices
        ]

    out = pl.pallas_call(
        kernel,
        out_shape=jax.ShapeDtypeStruct((M_pad, P), x.dtype),
        grid_spec=pltpu.PrefetchScalarGridSpec(
            num_scalar_prefetch=0,
            grid=grid,
            in_specs=[
                # x (full padded width): resident across the inner j axis; also
                # provides the residual (no duplicated x stream).
                pl.BlockSpec((tm_eff, P), lambda i, j: (i, 0)),
                pl.BlockSpec((1, P), lambda i, j: (0, 0)),     # gamma (f32)
                pl.BlockSpec((1, P), lambda i, j: (0, 0)),     # beta  (f32)
                pl.BlockSpec((P, tn), lambda i, j: (0, j)),    # W column tile
                pl.BlockSpec((1, tn), lambda i, j: (0, j)),    # linear bias
            ],
            out_specs=pl.BlockSpec((tm_eff, tn), lambda i, j: (i, j)),
            scratch_shapes=scratch_shapes,
        ),
        compiler_params=pltpu.CompilerParams(
            # j carries LN/residual scratch state -> "arbitrary"; only the
            # token axis i is sharded across TensorCores (v7x megacore).
            dimension_semantics=("parallel", "arbitrary"),
            vmem_limit_bytes=_vmem_limit_bytes(),
        ),
    )(x_p, params["gamma"], params["beta"], params["w"], params["bias"])

    return out[:M, :D].reshape(B, S, D)


def reference(x, gamma, beta, w, b):
    xf = x.astype(jnp.float32)
    mean = jnp.mean(xf, axis=-1, keepdims=True)
    var = jnp.mean((xf - mean) ** 2, axis=-1, keepdims=True)
    xhat = (xf - mean) / jnp.sqrt(var + EPS)
    y = xhat * gamma + beta
    fn_out = y @ w + b
    return (fn_out + xf).astype(x.dtype)


def _make_case(key, B, S, D):
    kx, kg, kb, kw, kbias = jax.random.split(key, 5)
    x = jax.random.normal(kx, (B, S, D), dtype=jnp.float32)
    gamma = 1.0 + 0.01 * jax.random.normal(kg, (D,), dtype=jnp.float32)
    beta = 0.01 * jax.random.normal(kb, (D,), dtype=jnp.float32)
    w = jax.random.normal(kw, (D, D), dtype=jnp.float32) / jnp.sqrt(D)
    b = 0.01 * jax.random.normal(kbias, (D,), dtype=jnp.float32)
    return x, gamma, beta, w, b


if __name__ == "__main__":
    key = jax.random.PRNGKey(0)
    k_small, k_big = jax.random.split(key)

    # Small shape consistent with the module: (batch=2, seq=8, dim=32).
    x, gamma, beta, w, b = _make_case(k_small, 2, 8, 32)
    params = prepare_params(gamma, beta, w, b)           # one-time param prep
    out = jax.block_until_ready(prenorm_residual(x, params))
    ref = reference(x, gamma, beta, w, b)
    assert out.shape == x.shape
    # bf16 matmul (f32 accumulation) -> loose-but-meaningful tolerance vs f32 ref.
    assert jnp.allclose(out, ref, atol=5e-2, rtol=5e-2), "mismatch (small)"

    # Second case exercising token padding, feature padding, multiple token
    # tiles and multiple weight-column tiles (LN-cache + residual-stash path).
    x2, g2, b2, w2, bb2 = _make_case(k_big, 2, 300, 640)
    params2 = prepare_params(g2, b2, w2, bb2)
    out2 = jax.block_until_ready(prenorm_residual(x2, params2, tm=128, tn_max=384))
    ref2 = reference(x2, g2, b2, w2, bb2)
    assert out2.shape == x2.shape
    assert jnp.allclose(out2, ref2, atol=5e-2, rtol=5e-2), "mismatch (tiled)"

    print("KERNEL_OK")
</pallas_src>

<mosaic_0001>
module attributes {stable_mosaic.version = 11 : i64} {
  func.func @_prenorm_linear_kernel(%arg0: i32, %arg1: i32, %arg2: memref<16x128xf32, #tpu.memory_space<vmem>>, %arg3: memref<1x128xf32, #tpu.memory_space<vmem>>, %arg4: memref<1x128xf32, #tpu.memory_space<vmem>>, %arg5: memref<128x128xbf16, #tpu.memory_space<vmem>>, %arg6: memref<1x128xf32, #tpu.memory_space<vmem>>, %arg7: memref<16x128xf32, #tpu.memory_space<vmem>>) attributes {dimension_semantics = [#tpu.dimension_semantics<parallel>, #tpu.dimension_semantics<arbitrary>], iteration_bounds = array<i64: 1, 1>, scalar_prefetch = 0 : i64, scratch_operands = 0 : i64, tpu.core_type = #tpu.core_type<tc>, window_params = [{transform_indices = @transform_0, window_bounds = array<i64: 16, 128>}, {pipeline_mode = #tpu.pipeline_mode<synchronous>, transform_indices = @transform_1, window_bounds = array<i64: 1, 128>}, {pipeline_mode = #tpu.pipeline_mode<synchronous>, transform_indices = @transform_2, window_bounds = array<i64: 1, 128>}, {transform_indices = @transform_3, window_bounds = array<i64: 128, 128>}, {transform_indices = @transform_4, window_bounds = array<i64: 1, 128>}, {transform_indices = @transform_5, window_bounds = array<i64: 16, 128>}]} {
    %c0 = arith.constant 0 : index
    %c0_0 = arith.constant 0 : index
    %0 = vector.load %arg2[%c0, %c0_0] : memref<16x128xf32, #tpu.memory_space<vmem>>, vector<16x128xf32>
    %cst = arith.constant dense<0.000000e+00> : vector<16xf32>
    %1 = vector.multi_reduction <add>, %0, %cst [1] : vector<16x128xf32> to vector<16xf32>
    %2 = vector.shape_cast %1 : vector<16xf32> to vector<16x1xf32>
    %cst_1 = arith.constant 3.125000e-02 : f32
    %3 = vector.broadcast %cst_1 : f32 to vector<16x1xf32>
    %4 = arith.mulf %2, %3 : vector<16x1xf32>
    %5 = tpu.iota {dimensions = array<i32: 1>} : vector<1x128xi32>
    %c32_i32 = arith.constant 32 : i32
    %6 = vector.broadcast %c32_i32 : i32 to vector<1x128xi32>
    %7 = arith.cmpi slt, %5, %6 : vector<1x128xi32>
    %8 = vector.broadcast %4 : vector<16x1xf32> to vector<16x128xf32>
    %9 = arith.subf %0, %8 : vector<16x128xf32>
    %cst_2 = arith.constant 0.000000e+00 : f32
    %10 = vector.shape_cast %7 : vector<1x128xi1> to vector<1x128xi1>
    %11 = vector.broadcast %10 : vector<1x128xi1> to vector<16x128xi1>
    %12 = vector.broadcast %cst_2 : f32 to vector<16x128xf32>
    %13 = arith.select %11, %9, %12 : vector<16x128xi1>, vector<16x128xf32>
    %14 = arith.mulf %13, %13 : vector<16x128xf32>
    %cst_3 = arith.constant dense<0.000000e+00> : vector<16xf32>
    %15 = vector.multi_reduction <add>, %14, %cst_3 [1] : vector<16x128xf32> to vector<16xf32>
    %16 = vector.shape_cast %15 : vector<16xf32> to vector<16x1xf32>
    %cst_4 = arith.constant 3.125000e-02 : f32
    %17 = vector.broadcast %cst_4 : f32 to vector<16x1xf32>
    %18 = arith.mulf %16, %17 : vector<16x1xf32>
    %cst_5 = arith.constant 9.99999974E-6 : f32
    %19 = vector.broadcast %cst_5 : f32 to vector<16x1xf32>
    %20 = arith.addf %18, %19 : vector<16x1xf32>
    %21 = math.rsqrt %20 : vector<16x1xf32>
    %22 = vector.broadcast %21 : vector<16x1xf32> to vector<16x128xf32>
    %23 = arith.mulf %13, %22 : vector<16x128xf32>
    %c0_6 = arith.constant 0 : index
    %c0_7 = arith.constant 0 : index
    %24 = vector.load %arg3[%c0_6, %c0_7] : memref<1x128xf32, #tpu.memory_space<vmem>>, vector<1x128xf32>
    %25 = vector.broadcast %24 : vector<1x128xf32> to vector<16x128xf32>
    %26 = arith.mulf %23, %25 : vector<16x128xf32>
    %c0_8 = arith.constant 0 : index
    %c0_9 = arith.constant 0 : index
    %27 = vector.load %arg4[%c0_8, %c0_9] : memref<1x128xf32, #tpu.memory_space<vmem>>, vector<1x128xf32>
    %28 = vector.broadcast %27 : vector<1x128xf32> to vector<16x128xf32>
    %29 = arith.addf %26, %28 : vector<16x128xf32>
    %30 = arith.truncf %29 : vector<16x128xf32> to vector<16x128xbf16>
    %c0_10 = arith.constant 0 : index
    %c0_11 = arith.constant 0 : index
    %31 = vector.load %arg5[%c0_10, %c0_11] : memref<128x128xbf16, #tpu.memory_space<vmem>>, vector<128x128xbf16>
    %cst_12 = arith.constant dense<0.000000e+00> : vector<16x128xf32>
    %32 = tpu.matmul %30, %31, %cst_12 {dimension_numbers = #tpu.dot_dimension_numbers<[1], [0], [0], [1], [0, 0, 1, 1], [], []>} : vector<16x128xbf16>, vector<128x128xbf16>, vector<16x128xf32> -> vector<16x128xf32>
    %c0_13 = arith.constant 0 : index
    %c0_14 = arith.constant 0 : index
    %33 = vector.load %arg6[%c0_13, %c0_14] : memref<1x128xf32, #tpu.memory_space<vmem>>, vector<1x128xf32>
    %34 = vector.broadcast %33 : vector<1x128xf32> to vector<16x128xf32>
    %35 = arith.addf %32, %34 : vector<16x128xf32>
    %36 = arith.addf %35, %0 : vector<16x128xf32>
    %c0_15 = arith.constant 0 : index
    %c0_16 = arith.constant 0 : index
    %37 = vector.load %arg7[%c0_15, %c0_16] : memref<16x128xf32, #tpu.memory_space<vmem>>, vector<16x128xf32>
    tpu.vector_store %arg7[%c0_15, %c0_16], %36 {strides = array<i32>} : memref<16x128xf32, #tpu.memory_space<vmem>>, vector<16x128xf32>,
    return
  }
  func.func @transform_0(%arg0: i32, %arg1: i32) -> (i32, i32) {
    %c0_i32 = arith.constant 0 : i32
    %c0_i32_0 = arith.constant 0 : i32
    return %arg0, %c0_i32 : i32, i32
  }
  func.func @transform_1(%arg0: i32, %arg1: i32) -> (i32, i32) {
    %c0_i32 = arith.constant 0 : i32
    %c0_i32_0 = arith.constant 0 : i32
    %c0_i32_1 = arith.constant 0 : i32
    return %c0_i32, %c0_i32_0 : i32, i32
  }
  func.func @transform_2(%arg0: i32, %arg1: i32) -> (i32, i32) {
    %c0_i32 = arith.constant 0 : i32
    %c0_i32_0 = arith.constant 0 : i32
    %c0_i32_1 = arith.constant 0 : i32
    return %c0_i32, %c0_i32_0 : i32, i32
  }
  func.func @transform_3(%arg0: i32, %arg1: i32) -> (i32, i32) {
    %c0_i32 = arith.constant 0 : i32
    %c0_i32_0 = arith.constant 0 : i32
    return %c0_i32, %arg1 : i32, i32
  }
  func.func @transform_4(%arg0: i32, %arg1: i32) -> (i32, i32) {
    %c0_i32 = arith.constant 0 : i32
    %c0_i32_0 = arith.constant 0 : i32
    return %c0_i32, %arg1 : i32, i32
  }
  func.func @transform_5(%arg0: i32, %arg1: i32) -> (i32, i32) {
    %c0_i32 = arith.constant 0 : i32
    return %arg0, %arg1 : i32, i32
  }
}

</mosaic_0001>

<bundles_post_ra>
// kernel: tpu_custom_call.1
= control target key start
LH: loop header
LB: loop body
LE: loop exit
PB: predicated region body
PF: predicated region fallthrough
CT: control target
= control target key end

     0   :  { %10 = vsyncpa [#allocation3], 0  ;;  %s463_s0 = inlined_call_operand.hbm [shape: f32[16,128], index: 0, kind: input, shape index: {}]   ;;  %s464_s1 = inlined_call_operand.hbm [shape: f32[1,128], index: 1, kind: input, shape index: {}]   ;;  %s465_s2 = inlined_call_operand.vmem [shape: f32[1,128], index: 2, kind: input, shape index: {}]   ;;  %s466_s3 = inlined_call_operand.hbm [shape: bf16[128,128], index: 3, kind: input, shape index: {}]   ;;  %s467_s4 = inlined_call_operand.vmem [shape: f32[1,128], index: 4, kind: input, shape index: {}]   ;;  %s468_s5 = inlined_call_operand.hbm [shape: f32[16,128], index: 5, kind: output, shape index: {}]  }
   0x1   :  { %11 = vsyncpa [#allocation6], 0  ;;  %s31_s20 = sshll.u32 %s464_s1, 4  ;;  %s32_s20 = int_to_ptr.hbm [resolvable:$true] %s31_s20 }
   0x2   :  { %12 = vsyncpa [#allocation4], 0  ;;  %s391_s21 = smov [#allocation5]   ;;  %s17_s25 = sshll.u32 %s463_s0, 4  ;;  %s18_s25 = int_to_ptr.hbm [resolvable:$true] %s17_s25 }
   0x3   :  { %s33_s22 = sshll.u32 %s391_s21, 4  ;;  %s392_s26 = smov [#allocation2]   ;;  %s34_s22 = int_to_ptr.vmem [resolvable:$true] %s33_s22 }
   0x4   :  { %36 = dma.hbm_to_vmem [thread:$0]  %s32_s20, 16, %s34_s22, [#allocation6]  }
   0x5   :  { %s19_s27 = sshll.u32 %s392_s26, 4  ;;  %s393_s28 = smov 128   ;;  %s20_s27 = int_to_ptr.vmem [resolvable:$true] %s19_s27 }
   0x6   :  { %s394_s29 = smov 8   ;;  %s43_s6 = sshll.u32 %s466_s3, 4  ;;  %s44_s6 = int_to_ptr.hbm [resolvable:$true] %s43_s6 }
   0x7   :  { %25 = dma.hbm_to_vmem [thread:$0]  %s18_s25, 256, %s20_s27, [#allocation3], %s393_s28, %s393_s28, %s394_s29  }
   0x8   :  { %s395_s7 = smov [#allocation7]   ;;  %s396_s0 = smov 64  }
   0x9   :  { %s45_s8 = sshll.u32 %s395_s7, 4  ;;  %s397_s9 = smov 4   ;;  %s46_s8 = int_to_ptr.vmem [resolvable:$true] %s45_s8 }
   0xa   :  { %51 = dma.hbm_to_vmem [thread:$0]  %s44_s6, 1024, %s46_s8, [#allocation6], %s396_s0, %s396_s0, %s397_s9  }
   0xb   :  { %385 = dma.done.wait [#allocation3], 256  }
   0xc   :  { %386 = vsyncadd [#allocation3], 4294967040 }
   0xd   :  { %387 = dma.done.wait [#allocation6], 1040  }
   0xe   :  { %388 = vsyncadd [#allocation6], 4294966256  ;;  %v441_v0 = vld [vmem:[#allocation2] sm:$0xff]  ;;  %v444_v1 = vld [vmem:[#allocation2 + $0x8] sm:$0xff]  ;;  %v74_v2 = vlaneseq  ;;  %s398_s13 = smov [#allocation8]  }
   0xf   :  { %68 = vadd.xlane.f32.xlu0 %v441_v0  ;;  %v273_v14 = vld [vmem:[#allocation7 + $0x38] sm:$0xff]  ;;  %v272_v15 = vld [vmem:[#allocation7 + $0x30] sm:$0xff]  ;;  %v271_v16 = vld [vmem:[#allocation7 + $0x28] sm:$0xff]  ;;  %s218_s14 = sshll.u32 %s398_s13, 4  ;;  %s219_s14 = int_to_ptr.vmem [resolvable:$true] %s218_s14 }
  0x10   :  { %v75_v3 = vand.u32 127, %v74_v2  ;;  %196 = vmatpush.bf16.msra.mxu0 %v273_v14  ;;  %v270_v17 = vld [vmem:[#allocation7 + $0x20] sm:$0xff]  ;;  %v269_v18 = vld [vmem:[#allocation7 + $0x18] sm:$0xff]  ;;  %v268_v19 = vld [vmem:[#allocation7 + $0x10] sm:$0xff] }
  0x11   :  { %v267_v20 = vld [vmem:[#allocation7 + $0x8] sm:$0xff]  ;;  %v266_v22 = vld [vmem:[#allocation7] sm:$0xff]  ;;  %v282_v41 = vld [vmem:[#allocation5] ss:$0 sm:$0xff] }
  0x12   :  { %vm76_vm0 = vcmp.lt.s32.totalorder %v75_v3, 32  ;;  %v283_v46 = vld [vmem:[%s465_s2] ss:$0 sm:$0xff]  ;;  %s220_s2 = sshll.u32 %s468_s5, 4  ;;  %s221_s2 = int_to_ptr.hbm [resolvable:$true] %s220_s2 }
  0x13   :  { %v284_v51 = vld [vmem:[%s467_s4] ss:$0 sm:$0xff] }
  0x14   :  { %197 = vmatpush.bf16.msra.mxu0 %v272_v15 }
  0x17   :  { %70 = vadd.xlane.f32.xlu0 %v444_v1 }
  0x18   :  { %198 = vmatpush.bf16.msra.mxu0 %v271_v16 }
  0x1c   :  { %199 = vmatpush.bf16.msra.mxu0 %v270_v17 }
  0x20   :  { %200 = vmatpush.bf16.msra.mxu0 %v269_v18 }
  0x24   :  { %201 = vmatpush.bf16.msra.mxu0 %v268_v19 }
  0x28   :  { %202 = vmatpush.bf16.msra.mxu0 %v267_v20 }
  0x2c   :  { %203 = vmatpush.bf16.msra.mxu0 %v266_v22 }
  0x82   :  { %v69_v4 = vpop.xlane.xlu0 %68 }
  0x83   :  { %v72_v5 = vmul.f32 0.03125, %v69_v4 }
  0x85   :  { %v77_v6 = vsub.f32 %v441_v0, %v72_v5 }
  0x87   :  { %v81_v7 = vsel %vm76_vm0, %v77_v6, 0.0 }
  0x88   :  { %v83_v8 = vmul.f32 %v81_v7, %v81_v7 }
  0x8a   :  { %85 = vadd.xlane.f32.xlu1 %v83_v8  ;;  %v71_v9 = vpop.xlane.xlu0 %70 }
  0x8b   :  { %v73_v10 = vmul.f32 0.03125, %v71_v9 }
  0x8d   :  { %v78_v11 = vsub.f32 %v444_v1, %v73_v10 }
  0x8f   :  { %v82_v12 = vsel %vm76_vm0, %v78_v11, 0.0 }
  0x90   :  { %v84_v13 = vmul.f32 %v82_v12, %v82_v12 }
  0x92   :  { %87 = vadd.xlane.f32.xlu1 %v84_v13 }
  0xfd   :  { %v86_v21 = vpop.xlane.xlu1 %85 }
  0xfe   :  { %v89_v23 = vmul.f32 0.03125, %v86_v21 }
 0x100   :  { %v91_v24 = vadd.f32 1e-05, %v89_v23 }
 0x102   :  { %285 = vrsqrt.f32 %v91_v24  ;;  %vm99_vm2 = vweird.f32 %v91_v24 }
 0x105   :  { %v88_v25 = vpop.xlane.xlu1 %87 }
 0x106   :  { %v90_v26 = vmul.f32 0.03125, %v88_v25 }
 0x108   :  { %v286_v27 = vpop.eup %285  ;;  %v92_v28 = vadd.f32 1e-05, %v90_v26 }
 0x109   :  { %v94_v29 = vmul.f32 %v286_v27, %v91_v24  ;;  %vm100_vm1 = vweird.f32 %v286_v27 }
 0x10a   :  { %287 = vrsqrt.f32 %v92_v28  ;;  %vm101_vm3 = vmor %vm99_vm2, %vm100_vm1  ;;  %vm109_vm5 = vweird.f32 %v92_v28 }
 0x10b   :  { %v95_v30 = vmul.f32 %v286_v27, %v94_v29 }
 0x10d   :  { %v96_v31 = vmul.f32 0.5, %v95_v30 }
 0x10f   :  { %v97_v32 = vsub.f32 1.5, %v96_v31 }
 0x110   :  { %v288_v33 = vpop.eup %287 }
 0x111   :  { %v98_v34 = vmul.f32 %v286_v27, %v97_v32  ;;  %v104_v35 = vmul.f32 %v288_v33, %v92_v28  ;;  %vm110_vm4 = vweird.f32 %v288_v33 }
 0x112   :  { %vm111_vm6 = vmor %vm109_vm5, %vm110_vm4 }
 0x113   :  { %v105_v36 = vmul.f32 %v288_v33, %v104_v35  ;;  %v102_v38 = vsel %vm101_vm3, %v286_v27, %v98_v34 }
 0x114   :  { %v113_v40 = vmul.f32 %v102_v38, %v81_v7 }
 0x115   :  { %v106_v37 = vmul.f32 0.5, %v105_v36 }
 0x116   :  { %v119_v45 = vmul.f32 %v282_v41, %v113_v40 }
 0x117   :  { %v107_v39 = vsub.f32 1.5, %v106_v37 }
 0x118   :  { %v125_v48 = vadd.f32 %v283_v46, %v119_v45 }
 0x119   :  { %v108_v42 = vmul.f32 %v288_v33, %v107_v39 }
 0x11b   :  { %v112_v43 = vsel %vm111_vm6, %v288_v33, %v108_v42 }
 0x11c   :  { %v114_v44 = vmul.f32 %v112_v43, %v82_v12 }
 0x11e   :  { %v120_v47 = vmul.f32 %v282_v41, %v114_v44 }
 0x120   :  { %v126_v49 = vadd.f32 %v283_v46, %v120_v47 }
 0x122   :  { %v127_v50 = vpack.c.bf16 %v126_v49, %v125_v48 }
 0x124   :  { %204 = vmatmul.bf16.vlgmr.msra.gmra.mxu0 %v127_v50 }
 0x1a1   :  { %v205_v52 = vpop.f32.mrf.mxu0 }
 0x1a2   :  { %v206_v53 = vadd.f32 %v284_v51, %v205_v52 }
 0x1a4   :  { %v210_v54 = vadd.f32 %v206_v53, %v441_v0 }
 0x1a6   :  { %212 = vst [vmem:[#allocation8] sm:$0xff] %v210_v54 }
 0x1a9   :  { %v207_v55 = vpop.f32.mrf.mxu0 }
 0x1aa   :  { %v208_v56 = vadd.f32 %v284_v51, %v207_v55 }
 0x1ac   :  { %v211_v57 = vadd.f32 %v208_v56, %v444_v1 }
 0x1ae   :  { %213 = vst [vmem:[#allocation8 + $0x8] sm:$0xff] %v211_v57 }
 0x1af   :  { %226 = dma.vmem_to_hbm [thread:$0]  %s219_s14, 256, %s221_s2, [#allocation4], %s393_s28, %s393_s28, %s394_s29  }
 0x1b0   :  { %389 = dma.done.wait [#allocation4], 256  }
 0x1b1   :  { %390 = vsyncadd [#allocation4], 4294967040 }
 0x1b2   :  { %231 = vsyncpa [#allocation3], 1 }
 0x1b3   :  { %232 = vsyncpa [#allocation6], 1 }
 0x1b4   :  { %233 = vsyncpa [#allocation4], 1 }

</bundles_post_ra>
